<compile_context>
chip_gen: v7x
topology: tpu7x:2x2x1
jax: 0.10.0
libtpu: 0.0.40
codegen_flags: <defaults>
</compile_context>

<pallas_src>
import jax
import jax.numpy as jnp
from jax.experimental import pallas as pl
from jax.experimental.pallas import tpu as pltpu

NUM_CHANNELS = 32   # Decoder(num_channels)
IN_DIM, H1, H2 = 3, 50, 100


def _round_up(n, m):
    return ((n + m - 1) // m) * m


def decoder_kernel(x_ref, w1_ref, b1_ref, w2_ref, b2_ref, w3_ref, b3_ref, o_ref):
    # Feature-major: batch on the 128-lane axis, features on sublanes.
    x = x_ref[...]                                                    # (3, TB)

    # Layer 1 on the MXU: tiny padded (50,3)x(3,TB) pass; MXU has full slack
    # here and this avoids per-element cross-lane (XLU) broadcasts.
    h1 = jnp.dot(w1_ref[...], x, preferred_element_type=jnp.float32)
    h1 = jnp.maximum(h1 + b1_ref[...], 0.0)                           # (50, TB)

    h2 = jnp.dot(w2_ref[...], h1, preferred_element_type=jnp.float32)
    h2 = jnp.maximum(h2 + b2_ref[...], 0.0)                           # (100, TB)

    z = jnp.dot(w3_ref[...], h2, preferred_element_type=jnp.float32) + b3_ref[...]
    # Sigmoid via tanh: sigmoid(z) == 0.5*tanh(0.5*z) + 0.5 (EUP slot, no f32
    # divide on the hot path).  Lane-dense (C, TB) store -> unmasked vst.
    o_ref[...] = 0.5 * jnp.tanh(0.5 * z) + 0.5
    # GaussianSmoothing is dead code at these shapes (spatial length 1 <= 20),
    # so it is intentionally not materialized in the kernel.


def decoder_forward(x, params, *, block_b=4096):
    """Fused Decoder forward.  x: (B, 3) f32 -> (B, C) f32."""
    w1, b1, w2, b2, w3, b3 = params          # PyTorch layouts: W (out,in), b (out,1)
    B = x.shape[0]
    C = w3.shape[0]

    # --- Batch tiling: lane-axis tile, multiple of 128. -----------------------
    b128 = _round_up(B, 128)
    if b128 <= 128:
        tb = 128                              # whole batch in a single grid step
    else:
        # Keep >= 2 grid steps so a megacore-"parallel" batch axis has work to
        # split (v7x), but cap the per-step tile at block_b (VMEM-budgeted).
        tb = min(_round_up(block_b, 128), _round_up((b128 + 1) // 2, 128))
    b_pad = _round_up(B, tb)
    grid = (b_pad // tb,)

    # Feature-major input: (3, b_pad).  Padded columns give pure-bias outputs;
    # harmless because the wrapper slices [:, :B] before transposing back.
    xT = x.T
    if b_pad != B:
        xT = jnp.pad(xT, ((0, 0), (0, b_pad - B)))

    # Streaming specs for activations; constant index_map keeps weights/biases
    # VMEM-resident across all grid steps.
    def resident(arr):
        return pl.BlockSpec(arr.shape, lambda i: (0, 0))

    # --- Explicit VMEM budget (re-derived for v7x's 64 MiB physical VMEM). ----
    def pad8(n):
        return _round_up(n, 8)
    # f32 words per batch element resident in VMEM:
    #   x (double-buffered) + out (double-buffered) + h1 + h2 + z temporaries.
    words_per_col = 2 * pad8(IN_DIM) + 2 * pad8(C) + pad8(H1) + 2 * pad8(H2)
    est_bytes = 4 * tb * words_per_col + (1 << 20)       # + weights/biases/slack
    vmem_limit = int(min(max(2 * est_bytes, 16 << 20), 32 << 20))

    flops = 2 * b_pad * (IN_DIM * H1 + H1 * H2 + H2 * C)
    weight_bytes = 4 * (IN_DIM * H1 + H1 + H1 * H2 + H2 + H2 * C + C)
    cost = pl.CostEstimate(
        flops=flops,
        transcendentals=b_pad * C,
        bytes_accessed=4 * b_pad * (IN_DIM + C) + weight_bytes,
    )

    out_t = pl.pallas_call(
        decoder_kernel,
        out_shape=jax.ShapeDtypeStruct((C, b_pad), jnp.float32),
        grid=grid,
        in_specs=[
            pl.BlockSpec((IN_DIM, tb), lambda i: (0, i)),
            resident(w1), resident(b1),
            resident(w2), resident(b2),
            resident(w3), resident(b3),
        ],
        out_specs=pl.BlockSpec((C, tb), lambda i: (0, i)),
        compiler_params=pltpu.CompilerParams(
            # TODO(synk): on v7x, switch this axis to pltpu.CORE_PARALLEL (or
            # pl.core_map) if plain "parallel" does not split across the 2 TCs.
            dimension_semantics=("parallel",),
            vmem_limit_bytes=vmem_limit,
        ),
        cost_estimate=cost,
    )(xT, w1, b1, w2, b2, w3, b3)
    return out_t[:, :B].T


def init_params(key):
    # Deterministic synthetic init (uniform, roughly PyTorch Linear scale).
    ks = jax.random.split(key, 6)

    def unif(k, shape, fan_in):
        bound = 1.0 / jnp.sqrt(fan_in)
        return jax.random.uniform(k, shape, jnp.float32, -bound, bound)

    w1 = unif(ks[0], (H1, IN_DIM), IN_DIM)          # fc1.weight  (out, in)
    b1 = unif(ks[1], (H1, 1), IN_DIM)               # fc1.bias    (out, 1)
    w2 = unif(ks[2], (H2, H1), H1)                  # fc2.weight
    b2 = unif(ks[3], (H2, 1), H1)                   # fc2.bias
    w3 = unif(ks[4], (NUM_CHANNELS, H2), H2)        # fc3.weight
    b3 = unif(ks[5], (NUM_CHANNELS, 1), H2)         # fc3.bias
    return (w1, b1, w2, b2, w3, b3)


def decoder_reference(x, params):
    w1, b1, w2, b2, w3, b3 = params
    h1 = jnp.maximum(x @ w1.T + b1[:, 0], 0.0)
    h2 = jnp.maximum(h1 @ w2.T + b2[:, 0], 0.0)
    out = jax.nn.sigmoid(h2 @ w3.T + b3[:, 0])
    # GaussianSmoothing branch not taken (spatial length 1 <= kernel_size 20).
    return out


if __name__ == "__main__":
    key = jax.random.PRNGKey(0)
    k_x, k_p = jax.random.split(key)

    # Deliberately not a tile multiple: exercises batch padding plus a
    # 2-step pipelined grid (128-row tiles) with VMEM-resident weights.
    B = 200
    x = jax.random.normal(k_x, (B, IN_DIM), dtype=jnp.float32)
    params = init_params(k_p)

    out = decoder_forward(x, params)
    out = jax.block_until_ready(out)

    ref = decoder_reference(x, params)
    assert out.shape == (B, NUM_CHANNELS)
    assert jnp.allclose(out, ref, atol=2e-5, rtol=2e-5), float(
        jnp.max(jnp.abs(out - ref))
    )

    print("KERNEL_OK")
</pallas_src>

<mosaic_0001>
module attributes {stable_mosaic.version = 11 : i64} {
  func.func @decoder_kernel(%arg0: i32, %arg1: memref<3x128xf32, #tpu.memory_space<vmem>>, %arg2: memref<50x3xf32, #tpu.memory_space<vmem>>, %arg3: memref<50x1xf32, #tpu.memory_space<vmem>>, %arg4: memref<100x50xf32, #tpu.memory_space<vmem>>, %arg5: memref<100x1xf32, #tpu.memory_space<vmem>>, %arg6: memref<32x100xf32, #tpu.memory_space<vmem>>, %arg7: memref<32x1xf32, #tpu.memory_space<vmem>>, %arg8: memref<32x128xf32, #tpu.memory_space<vmem>>) attributes {dimension_semantics = [#tpu.dimension_semantics<parallel>], iteration_bounds = array<i64: 2>, scalar_prefetch = 0 : i64, scratch_operands = 0 : i64, tpu.core_type = #tpu.core_type<tc>, window_params = [{transform_indices = @transform_0, window_bounds = array<i64: 3, 128>}, {pipeline_mode = #tpu.pipeline_mode<synchronous>, transform_indices = @transform_1, window_bounds = array<i64: 50, 3>}, {pipeline_mode = #tpu.pipeline_mode<synchronous>, transform_indices = @transform_2, window_bounds = array<i64: 50, 1>}, {pipeline_mode = #tpu.pipeline_mode<synchronous>, transform_indices = @transform_3, window_bounds = array<i64: 100, 50>}, {pipeline_mode = #tpu.pipeline_mode<synchronous>, transform_indices = @transform_4, window_bounds = array<i64: 100, 1>}, {pipeline_mode = #tpu.pipeline_mode<synchronous>, transform_indices = @transform_5, window_bounds = array<i64: 32, 100>}, {pipeline_mode = #tpu.pipeline_mode<synchronous>, transform_indices = @transform_6, window_bounds = array<i64: 32, 1>}, {transform_indices = @transform_7, window_bounds = array<i64: 32, 128>}]} {
    %c0 = arith.constant 0 : index
    %c0_0 = arith.constant 0 : index
    %0 = vector.load %arg1[%c0, %c0_0] : memref<3x128xf32, #tpu.memory_space<vmem>>, vector<3x128xf32>
    %c0_1 = arith.constant 0 : index
    %c0_2 = arith.constant 0 : index
    %1 = vector.load %arg2[%c0_1, %c0_2] : memref<50x3xf32, #tpu.memory_space<vmem>>, vector<50x3xf32>
    %cst = arith.constant dense<0.000000e+00> : vector<50x128xf32>
    %2 = tpu.matmul %1, %0, %cst {dimension_numbers = #tpu.dot_dimension_numbers<[1], [0], [0], [1], [0, 0, 1, 1], [], []>} : vector<50x3xf32>, vector<3x128xf32>, vector<50x128xf32> -> vector<50x128xf32>
    %c0_3 = arith.constant 0 : index
    %c0_4 = arith.constant 0 : index
    %3 = vector.load %arg3[%c0_3, %c0_4] : memref<50x1xf32, #tpu.memory_space<vmem>>, vector<50x1xf32>
    %4 = vector.broadcast %3 : vector<50x1xf32> to vector<50x128xf32>
    %5 = arith.addf %2, %4 : vector<50x128xf32>
    %cst_5 = arith.constant 0.000000e+00 : f32
    %6 = vector.broadcast %cst_5 : f32 to vector<50x128xf32>
    %7 = arith.maximumf %5, %6 : vector<50x128xf32>
    %c0_6 = arith.constant 0 : index
    %c0_7 = arith.constant 0 : index
    %8 = vector.load %arg4[%c0_6, %c0_7] : memref<100x50xf32, #tpu.memory_space<vmem>>, vector<100x50xf32>
    %cst_8 = arith.constant dense<0.000000e+00> : vector<100x128xf32>
    %9 = tpu.matmul %8, %7, %cst_8 {dimension_numbers = #tpu.dot_dimension_numbers<[1], [0], [0], [1], [0, 0, 1, 1], [], []>} : vector<100x50xf32>, vector<50x128xf32>, vector<100x128xf32> -> vector<100x128xf32>
    %c0_9 = arith.constant 0 : index
    %c0_10 = arith.constant 0 : index
    %10 = vector.load %arg5[%c0_9, %c0_10] : memref<100x1xf32, #tpu.memory_space<vmem>>, vector<100x1xf32>
    %11 = vector.broadcast %10 : vector<100x1xf32> to vector<100x128xf32>
    %12 = arith.addf %9, %11 : vector<100x128xf32>
    %cst_11 = arith.constant 0.000000e+00 : f32
    %13 = vector.broadcast %cst_11 : f32 to vector<100x128xf32>
    %14 = arith.maximumf %12, %13 : vector<100x128xf32>
    %c0_12 = arith.constant 0 : index
    %c0_13 = arith.constant 0 : index
    %15 = vector.load %arg6[%c0_12, %c0_13] : memref<32x100xf32, #tpu.memory_space<vmem>>, vector<32x100xf32>
    %cst_14 = arith.constant dense<0.000000e+00> : vector<32x128xf32>
    %16 = tpu.matmul %15, %14, %cst_14 {dimension_numbers = #tpu.dot_dimension_numbers<[1], [0], [0], [1], [0, 0, 1, 1], [], []>} : vector<32x100xf32>, vector<100x128xf32>, vector<32x128xf32> -> vector<32x128xf32>
    %c0_15 = arith.constant 0 : index
    %c0_16 = arith.constant 0 : index
    %17 = vector.load %arg7[%c0_15, %c0_16] : memref<32x1xf32, #tpu.memory_space<vmem>>, vector<32x1xf32>
    %18 = vector.broadcast %17 : vector<32x1xf32> to vector<32x128xf32>
    %19 = arith.addf %16, %18 : vector<32x128xf32>
    %cst_17 = arith.constant 5.000000e-01 : f32
    %20 = vector.broadcast %cst_17 : f32 to vector<32x128xf32>
    %21 = arith.mulf %20, %19 : vector<32x128xf32>
    %22 = math.tanh %21 : vector<32x128xf32>
    %cst_18 = arith.constant 5.000000e-01 : f32
    %23 = vector.broadcast %cst_18 : f32 to vector<32x128xf32>
    %24 = arith.mulf %23, %22 : vector<32x128xf32>
    %cst_19 = arith.constant 5.000000e-01 : f32
    %25 = vector.broadcast %cst_19 : f32 to vector<32x128xf32>
    %26 = arith.addf %24, %25 : vector<32x128xf32>
    %c0_20 = arith.constant 0 : index
    %c0_21 = arith.constant 0 : index
    %27 = vector.load %arg8[%c0_20, %c0_21] : memref<32x128xf32, #tpu.memory_space<vmem>>, vector<32x128xf32>
    tpu.vector_store %arg8[%c0_20, %c0_21], %26 {strides = array<i32>} : memref<32x128xf32, #tpu.memory_space<vmem>>, vector<32x128xf32>,
    return
  }
  func.func @transform_0(%arg0: i32) -> (i32, i32) {
    %c0_i32 = arith.constant 0 : i32
    %c0_i32_0 = arith.constant 0 : i32
    return %c0_i32, %arg0 : i32, i32
  }
  func.func @transform_1(%arg0: i32) -> (i32, i32) {
    %c0_i32 = arith.constant 0 : i32
    %c0_i32_0 = arith.constant 0 : i32
    %c0_i32_1 = arith.constant 0 : i32
    return %c0_i32, %c0_i32_0 : i32, i32
  }
  func.func @transform_2(%arg0: i32) -> (i32, i32) {
    %c0_i32 = arith.constant 0 : i32
    %c0_i32_0 = arith.constant 0 : i32
    %c0_i32_1 = arith.constant 0 : i32
    return %c0_i32, %c0_i32_0 : i32, i32
  }
  func.func @transform_3(%arg0: i32) -> (i32, i32) {
    %c0_i32 = arith.constant 0 : i32
    %c0_i32_0 = arith.constant 0 : i32
    %c0_i32_1 = arith.constant 0 : i32
    return %c0_i32, %c0_i32_0 : i32, i32
  }
  func.func @transform_4(%arg0: i32) -> (i32, i32) {
    %c0_i32 = arith.constant 0 : i32
    %c0_i32_0 = arith.constant 0 : i32
    %c0_i32_1 = arith.constant 0 : i32
    return %c0_i32, %c0_i32_0 : i32, i32
  }
  func.func @transform_5(%arg0: i32) -> (i32, i32) {
    %c0_i32 = arith.constant 0 : i32
    %c0_i32_0 = arith.constant 0 : i32
    %c0_i32_1 = arith.constant 0 : i32
    return %c0_i32, %c0_i32_0 : i32, i32
  }
  func.func @transform_6(%arg0: i32) -> (i32, i32) {
    %c0_i32 = arith.constant 0 : i32
    %c0_i32_0 = arith.constant 0 : i32
    %c0_i32_1 = arith.constant 0 : i32
    return %c0_i32, %c0_i32_0 : i32, i32
  }
  func.func @transform_7(%arg0: i32) -> (i32, i32) {
    %c0_i32 = arith.constant 0 : i32
    %c0_i32_0 = arith.constant 0 : i32
    return %c0_i32, %arg0 : i32, i32
  }
}

</mosaic_0001>

<bundles_post_ra>
// kernel: tpu_custom_call.1
= control target key start
LH: loop header
LB: loop body
LE: loop exit
PB: predicated region body
PF: predicated region fallthrough
CT: control target
= control target key end

     0   :  { %12 = vsyncpa [#allocation3], 0  ;;  %s1664_s0 = inlined_call_operand.vmem [shape: f32[3,256], index: 0, kind: input, shape index: {}]   ;;  %s1665_s1 = inlined_call_operand.vmem [shape: f32[50,3], index: 1, kind: input, shape index: {}]   ;;  %s1666_s2 = inlined_call_operand.vmem [shape: f32[50,1], index: 2, kind: input, shape index: {}]   ;;  %s1667_s3 = inlined_call_operand.vmem [shape: f32[100,50], index: 3, kind: input, shape index: {}]   ;;  %s1668_s4 = inlined_call_operand.vmem [shape: f32[100,1], index: 4, kind: input, shape index: {}]   ;;  %s1669_s5 = inlined_call_operand.vmem [shape: f32[32,100], index: 5, kind: input, shape index: {}]   ;;  %s1670_s6 = inlined_call_operand.vmem [shape: f32[32,1], index: 6, kind: input, shape index: {}]   ;;  %s1671_s7 = inlined_call_operand.hbm [shape: f32[32,256], index: 7, kind: output, shape index: {}]  }
   0x1   :  { %14 = vsyncpa [#allocation3 + $0x1], 0  ;;  %s1351_s24 = smov 0   ;;  %s1353_s25 = smov 0  }
   0x2   :  { %s1355_s26 = smov 0   ;;  %s1357_s27 = smov 0  }
   0x3 LB: > { %s1372_s28 = sadd.s32 4294967295, %s1301_s27   ;;  %s960_s29 = sadd.s32 4294967294, %s1301_s27   ;;  %s1301_s27 = sphi %s1357_s27, %s1677_s27   ;;  %s1297_s26 = sphi %s1355_s26, %s1676_s26   ;;  %s1293_s25 = sphi %s1353_s25, %s1675_s25   ;;  %s1289_s24 = sphi %s1351_s24, %s1674_s24  }
   0x4   : > { %s1376_s30 = sadd.s32 1, %s1301_s27   ;;  %s179_s8 = sadd.s32 1, %s1297_s26 }
   0x5   : > { %s176_s9 = ssub.s32 %s1301_s27, %s1376_s30  ;;  %p189_p0 = scmp.ne.s32.totalorder %s1297_s26, %s1293_s25 }
   0x6   : > { %p177_p1 = scmp.eq.s32.totalorder %s176_s9, 0  ;;  %p190_p2 = scmp.eq.s32.totalorder %s1372_s28, 1 }
   0x7   : > { %p195_p3 = scmp.ne.s32.totalorder %s1293_s25, %s1289_s24  ;;  %p196_p4 = scmp.eq.s32.totalorder %s960_s29, 1 }
   0x8   : > { %s1387_s10 = scalar_select %p177_p1, %s1297_s26, %s179_s8  }
   0x9   : > { %p1389_p5 = por %p190_p2, %p189_p0  ;;  %p1393_p6 = por %p196_p4, %p195_p3 }
   0xa   : > { %p963_p7 = scmp.ge.s32.totalorder %s1301_s27, 1  ;;  %p239_p8 = scmp.lt.s32.totalorder %s1301_s27, 3 }
   0xc   : > { %p240_p9 = pnand %p963_p7, %p239_p8 }
   0xd   : > { %p270_p10 = scmp.lt.s32.totalorder (!%p240_p9), %s1372_s28, 1  ;;  %v1303_v0 = vmov (!%p240_p9), 0.0   ;;  %vm1304_vm0 = vmmov (!%p240_p9), 0   ;;  %v1305_v1 = vmov (!%p240_p9), 0   ;;  %v282_v2 = vld [vmem:[%s1666_s2] sm:$0xff] (!%p240_p9)  ;;  %v284_v3 = vld [vmem:[%s1666_s2 + $0x10] sm:$0xff] (!%p240_p9) }
   0xe   : > { %243 = sbr.rel (%p240_p9) target bundleno = 790 (0x316), region = 48  ;;  %1042 = vmatprep.subr.mxu0 (!%p240_p9), %v1303_v0  ;;  %1044 = vmatprep.mubr.msk.f32.mxu0 (!%p240_p9), %vm1304_vm0, %v1303_v0  ;;  %vm346_vm1 = vcmask (!%p240_p9), 1042432   ;;  %v275_v4 = vld [vmem:[%s1665_s1] sm:$0xff] (!%p240_p9)  ;;  %vm324_vm2 = vcmask (!%p240_p9), 23552   ;;  %v283_v5 = vld [vmem:[%s1666_s2 + $0x8] sm:$0xff] (!%p240_p9)  ;;  %v285_v7 = vld [vmem:[%s1666_s2 + $0x18] sm:$0xff] (!%p240_p9) }
   0xf   : > { %1229 = vset.pattern.permute.xlu0 (!%p240_p9), %v1305_v1  ;;  %1230 = vset.pattern.permute.xlu1 (!%p240_p9), %v1305_v1  ;;  %v276_v8 = vld [vmem:[%s1665_s1 + $0x8] sm:$0xff] (!%p240_p9)  ;;  %v286_v9 = vld [vmem:[%s1666_s2 + $0x20] sm:$0xff] (!%p240_p9)  ;;  %v277_v11 = vld [vmem:[%s1665_s1 + $0x10] sm:$0xff] (!%p240_p9)  ;;  %v1306_v34 = vmov (!%p240_p9), 0.0|0.0   ;;  %vm588_vm3 = vcmask (!%p240_p9), 1041408   ;;  %vm548_vm4 = vcmask (!%p240_p9), 408576  }
  0x10   : > { %1079 = vmatprep.mubr.msk.f32.mxu1 (!%p240_p9), %vm1304_vm0, %v1303_v0  ;;  %291 = vperm.xlu0 (!%p240_p9), %1229, %v282_v2   ;;  %v287_v10 = vld [vmem:[%s1666_s2 + $0x28] sm:$0xff] (!%p240_p9)  ;;  %v288_v12 = vld [vmem:[%s1666_s2 + $0x30] sm:$0x3] (!%p240_p9)  ;;  %v470_v13 = vld [vmem:[%s1668_s4] sm:$0xff] (!%p240_p9)  ;;  %vm763_vm5 = vcmask (!%p240_p9), 818176   ;;  %vm776_vm6 = vcmask (!%p240_p9), 1043456  }
  0x11   : > { %301 = vperm.xlu1 (!%p240_p9), %1230, %v284_v3   ;;  %v278_v14 = vld [vmem:[%s1665_s1 + $0x18] sm:$0xff] (!%p240_p9)  ;;  %v471_v15 = vld [vmem:[%s1668_s4 + $0x8] sm:$0xff] (!%p240_p9)  ;;  %v472_v16 = vld [vmem:[%s1668_s4 + $0x10] sm:$0xff] (!%p240_p9)  ;;  %1150 = vmatprep.subr.bf16.mxu1 (!%p240_p9), %v1306_v34  ;;  %s267_s16 = sand.u32 (!%p240_p9), 1, %s1293_s25   ;;  %s994_s20 = sshll.u32 (!%p240_p9), %s1372_s28, 7 }
  0x12   : > { %v279_v17 = vld [vmem:[%s1665_s1 + $0x20] sm:$0xff] (!%p240_p9)  ;;  %v473_v18 = vld [vmem:[%s1668_s4 + $0x18] sm:$0xff] (!%p240_p9)  ;;  %v280_v20 = vld [vmem:[%s1665_s1 + $0x28] sm:$0xff] (!%p240_p9)  ;;  %s964_s17 = sshll.u32 (!%p240_p9), %s267_s16, 5  ;;  %s1621_s23 = scalar_lea.hbm (!%p240_p9), %s1671_s7, %s994_s20 }
  0x13   : > { %v474_v19 = vld [vmem:[%s1668_s4 + $0x20] sm:$0xff] (!%p240_p9)  ;;  %v475_v21 = vld [vmem:[%s1668_s4 + $0x28] sm:$0xff] (!%p240_p9)  ;;  %v476_v22 = vld [vmem:[%s1668_s4 + $0x30] sm:$0xff] (!%p240_p9)  ;;  %s1307_s8 = smov (!%p240_p9), [#allocation2]  }
  0x14   : > { %296 = vperm.xlu0 (!%p240_p9), %1229, %v283_v5   ;;  %v281_v23 = vld [vmem:[%s1665_s1 + $0x30] sm:$0x3] (!%p240_p9)  ;;  %v477_v24 = vld [vmem:[%s1668_s4 + $0x38] sm:$0xff] (!%p240_p9)  ;;  %v478_v25 = vld [vmem:[%s1668_s4 + $0x40] sm:$0xff] (!%p240_p9)  ;;  %s1243_s9 = sshll.u32 (!%p240_p9), %s1307_s8, 4  ;;  %s1244_s9 = int_to_ptr.vmem [resolvable:$false] %s1243_s9 }
  0x15   : > { %s271_s13 = scalar_select %p270_p10, %s1372_s28, 1  ;;  %306 = vperm.xlu1 %1230, %v285_v7   ;;  %v479_v26 = vld [vmem:[%s1668_s4 + $0x48] sm:$0xff]  ;;  %v480_v27 = vld [vmem:[%s1668_s4 + $0x50] sm:$0xff]  ;;  %v481_v28 = vld [vmem:[%s1668_s4 + $0x58] sm:$0xff] }
  0x16   : > { %v482_v29 = vld [vmem:[%s1668_s4 + $0x60] sm:$0xf]  ;;  %v740_v31 = vld [vmem:[%s1670_s6 + $0x8] sm:$0xff]  ;;  %v741_v32 = vld [vmem:[%s1670_s6 + $0x10] sm:$0xff]  ;;  %s1623_s28 = scalar_lea.sflag [#allocation3], %s267_s16  ;;  %s1245_s14 = scalar_lea.vmem %s1244_s9, 1024 }
  0x17   : > { %s965_s18 = sshll.u32 %s271_s13, 2  ;;  %v739_v30 = vld [vmem:[%s1670_s6] sm:$0xff]  ;;  %v742_v33 = vld [vmem:[%s1670_s6 + $0x18] sm:$0xff] }
  0x18   : > { %s273_s21 = scalar_lea.vmem %s1664_s0, %s965_s18  ;;  %311 = vperm.xlu0 %1229, %v286_v9   ;;  %s269_s18 = scalar_lea.vmem [#allocation2], %s964_s17 }
  0x19   : > { %v274_v6 = vld [vmem:[%s273_s21] sm:$0x7]  ;;  %316 = vperm.xlu1 %1230, %v287_v10   ;;  %s898_s19 = sshll.u32 %s269_s18, 4  ;;  %s1616_s19 = int_to_ptr.vmem [resolvable:$true] %s898_s19 }
  0x1a   : > { %1043 = vmatpush3.msk.msra.mxu0 %vm346_vm1, %v274_v6  ;;  %v457_v10 = vld [vmem:[%s1667_s3] sm:$0xff]  ;;  %s1239_s29 = scalar_lea.vmem %s1616_s19, 512  ;;  %p1246_p0 = scmp.lt.s32.totalorder %s1616_s19, %s1244_s9 }
  0x1b   : > { %1045 = vmatmul.mubr.msk.f32.vlgmr.msra.gmra.mrb[0].mxu0 %vm324_vm2, %v275_v4  ;;  %p1240_p11 = scmp.ne.s32.totalorder %s1616_s19, %s1239_s29  ;;  %p1247_p1 = scmp.lt.s32.totalorder %s1245_s14, %s1239_s29 }
  0x1c   : > { %1047 = vmatprep.mubr.msk.f32.mxu0 %vm1304_vm0, %v1303_v0  ;;  %321 = vperm.xlu0 %1229, %v288_v12   ;;  %v459_v12 = vld [vmem:[%s1667_s3 + $0x10] sm:$0xff] }
  0x1d   : > { %485 = vperm.xlu1 %1230, %v470_v13   ;;  %v460_v13 = vld [vmem:[%s1667_s3 + $0x18] sm:$0xff]  ;;  %p1241_p12 = pnand %p1240_p11, %p1389_p5  ;;  %p1248_p2 = por %p1247_p1, %p1246_p0 }
  0x1f   : > { %1048 = vmatmul.mubr.msk.f32.gmra.mrb[2].mxu0 %vm324_vm2, %v276_v8  ;;  %p1242_p13 = pneg %p1241_p12 }
  0x20   : > { %1050 = vmatprep.mubr.msk.f32.mxu0 %vm1304_vm0, %v1303_v0  ;;  %490 = vperm.xlu0 %1229, %v471_v15   ;;  %v462_v15 = vld [vmem:[%s1667_s3 + $0x28] sm:$0xff] }
  0x21   : > { %495 = vperm.xlu1 %1230, %v472_v16   ;;  %v463_v16 = vld [vmem:[%s1667_s3 + $0x30] sm:$0xff]  ;;  %p1249_p3 = pnand %p1248_p2, %p1242_p13 }
  0x23   : > { %1051 = vmatmul.mubr.msk.f32.gmra.mrb[4].mxu0 %vm324_vm2, %v277_v11  ;;  %v458_v11 = vld [vmem:[%s1667_s3 + $0x8] sm:$0xff] }
  0x24   : > { %1053 = vmatprep.mubr.msk.f32.mxu0 %vm1304_vm0, %v1303_v0  ;;  %500 = vperm.xlu0 %1229, %v473_v18   ;;  %v465_v18 = vld [vmem:[%s1667_s3 + $0x40] sm:$0xff] }
  0x25   : > { %505 = vperm.xlu1 %1230, %v474_v19   ;;  %v466_v19 = vld [vmem:[%s1667_s3 + $0x48] sm:$0xff] }
  0x27   : > { %1054 = vmatmul.mubr.msk.f32.gmra.mrb[6].mxu0 %vm324_vm2, %v278_v14  ;;  %v461_v14 = vld [vmem:[%s1667_s3 + $0x20] sm:$0xff] }
  0x28   : > { %1056 = vmatprep.mubr.msk.f32.mxu0 %vm1304_vm0, %v1303_v0  ;;  %510 = vperm.xlu0 %1229, %v475_v21   ;;  %v468_v21 = vld [vmem:[%s1667_s3 + $0x58] sm:$0xff] }
  0x29   : > { %515 = vperm.xlu1 %1230, %v476_v22   ;;  %v469_v22 = vld [vmem:[%s1667_s3 + $0x60] sm:$0xf] }
  0x2b   : > { %1057 = vmatmul.mubr.msk.f32.gmra.mrb[8].mxu0 %vm324_vm2, %v279_v17  ;;  %v464_v17 = vld [vmem:[%s1667_s3 + $0x38] sm:$0xff] }
  0x2c   : > { %1059 = vmatprep.mubr.msk.f32.mxu0 %vm1304_vm0, %v1303_v0  ;;  %520 = vperm.xlu0 %1229, %v477_v24  }
  0x2d   : > { %525 = vperm.xlu1 %1230, %v478_v25  }
  0x2f   : > { %1060 = vmatmul.mubr.msk.f32.gmra.mrb[10].mxu0 %vm324_vm2, %v280_v20  ;;  %v467_v20 = vld [vmem:[%s1667_s3 + $0x50] sm:$0xff] }
  0x30   : > { %1062 = vmatprep.mubr.msk.f32.mxu0 %vm1304_vm0, %v1303_v0  ;;  %530 = vperm.xlu0 %1229, %v479_v26  }
  0x31   : > { %535 = vperm.xlu1 %1230, %v480_v27  }
  0x33   : > { %1063 = vmatmul.mubr.msk.f32.gmra.mrb[12].mxu0 %vm324_vm2, %v281_v23  ;;  %v735_v23 = vld [vmem:[%s1669_s5] sm:$0xff] }
  0x34   : > { %540 = vperm.xlu0 %1229, %v481_v28   ;;  %1144 = vmatprep.mubr.msk.f32.mxu0 %vm763_vm5, %v735_v23 }
  0x35   : > { %545 = vperm.xlu1 %1230, %v482_v29  }
  0x38   : > { %745 = vperm.xlu0 %1229, %v739_v30  }
  0x39   : > { %750 = vperm.xlu1 %1230, %v740_v31  }
  0x3c   : > { %755 = vperm.xlu0 %1229, %v741_v32  }
  0x3d   : > { %760 = vperm.xlu1 %1230, %v742_v33  }
  0x8f   : > { %v292_v35 = vpop.permute.xlu0 %291 }
  0x90   : > { %v302_v43 = vpop.permute.xlu1 %301 }
  0x93   : > { %v297_v39 = vpop.permute.xlu0 %296 }
  0x94   : > { %v307_v50 = vpop.permute.xlu1 %306 }
  0x97   : > { %v312_v59 = vpop.permute.xlu0 %311 }
  0x98   : > { %v317_v61 = vpop.permute.xlu1 %316 }
  0x9b   : > { %v322_v4 = vpop.permute.xlu0 %321 }
  0x9c   : > { %v486_v26 = vpop.permute.xlu1 %485 }
  0x9f   : > { %v491_v28 = vpop.permute.xlu0 %490 }
  0xee   : > { %v416_v36 = vpop.f32.mrb[0].mxu0 }
  0xef   : > { %v1046_v37 = vpop.f32.mrb[1].mxu0  ;;  %v417_v38 = vadd.f32 %v416_v36, %v292_v35  ;;  %v496_v36 = vpop.permute.xlu1 %495 }
  0xf1   : > { %v450_v44 = vmax.f32 %v417_v38, 0.0  ;;  %v501_v38 = vpop.permute.xlu0 %500 }
  0xf2   : > { %v421_v40 = vpop.f32.mrb[2].mxu0 }
  0xf3   : > { %v422_v41 = vadd.f32 %v421_v40, %v297_v39  ;;  %v1049_v42 = vpop.f32.mrb[3].mxu0 }
  0xf5   : > { %v451_v45 = vmax.f32 %v422_v41, 0.0 }
  0xf6   : > { %v426_v46 = vpop.f32.mrb[4].mxu0 }
  0xf7   : > { %v1052_v47 = vpop.f32.mrb[5].mxu0  ;;  %v1151_v48 = vpack.c.bf16 %v451_v45, %v450_v44  ;;  %v427_v49 = vadd.f32 %v426_v46, %v302_v43 }
  0xf8   : > { %v506_v47 = vpop.permute.xlu1 %505 }
  0xf9   : > { %1152 = vmatpush3.bf16.msra.mxu1 %v1151_v48  ;;  %v452_v54 = vmax.f32 %v427_v49, 0.0  ;;  %v511_v49 = vpop.permute.xlu0 %510 }
  0xfa   : > { %v431_v51 = vpop.f32.mrb[6].mxu0  ;;  %1153 = vmatprep.subr.bf16.mxu1 %v1306_v34 }
  0xfb   : > { %v432_v52 = vadd.f32 %v431_v51, %v307_v50  ;;  %v1055_v53 = vpop.f32.mrb[7].mxu0 }
  0xfd   : > { %v453_v55 = vmax.f32 %v432_v52, 0.0 }
  0xfe   : > { %v436_v56 = vpop.f32.mrb[8].mxu0 }
  0xff   : > { %v1154_v57 = vpack.c.bf16 %v453_v55, %v452_v54  ;;  %v1058_v58 = vpop.f32.mrb[9].mxu0  ;;  %v437_v60 = vadd.f32 %v436_v56, %v312_v59 }
 0x100   : > { %v516_v58 = vpop.permute.xlu1 %515 }
 0x101   : > { %1155 = vmatpush3.bf16.msra.mxu1 %v1154_v57  ;;  %v454_v2 = vmax.f32 %v437_v60, 0.0  ;;  %v521_v60 = vpop.permute.xlu0 %520 }
 0x102   : > { %v441_v62 = vpop.f32.mrb[10].mxu0  ;;  %1156 = vmatprep.subr.bf16.mxu1 %v1306_v34 }
 0x103   : > { %v442_v63 = vadd.f32 %v441_v62, %v317_v61  ;;  %v1061_v1 = vpop.f32.mrb[11].mxu0 }
 0x105   : > { %v455_v3 = vmax.f32 %v442_v63, 0.0 }
 0x106   : > { %v446_v5 = vpop.f32.mrb[12].mxu0 }
 0x107   : > { %v1157_v6 = vpack.c.bf16 %v455_v3, %v454_v2  ;;  %v447_v7 = vadd.f32 %v446_v5, %v322_v4  ;;  %v1064_v8 = vpop.f32.mrb[13].mxu0 }
 0x108   : > { %v531_v8 = vpop.permute.xlu0 %530 }
 0x109   : > { %1158 = vmatpush3.bf16.msra.mxu1 %v1157_v6  ;;  %v456_v9 = vmax.f32 %v447_v7, 0.0  ;;  %v526_v6 = vpop.permute.xlu1 %525 }
 0x10a   : > { %1077 = vmatprep.subr.mxu1 %v1303_v0 }
 0x10d   : > { %1078 = vmatpush3.msk.msra.mxu1 %vm588_vm3, %v456_v9 }
 0x10e   : > { %1080 = vmatmul.mubr.msk.f32.vlgmr.msra.gmra.mrb[0].mxu1 %vm548_vm4, %v457_v10 }
 0x10f   : > { %1082 = vmatprep.mubr.msk.f32.mxu1 %vm1304_vm0, %v1303_v0 }
 0x112   : > { %1083 = vmatmul.mubr.msk.f32.gmra.mrb[2].mxu1 %vm548_vm4, %v458_v11 }
 0x113   : > { %1085 = vmatprep.mubr.msk.f32.mxu1 %vm1304_vm0, %v1303_v0 }
 0x116   : > { %1086 = vmatmul.mubr.msk.f32.gmra.mrb[4].mxu1 %vm548_vm4, %v459_v12 }
 0x117   : > { %1088 = vmatprep.mubr.msk.f32.mxu1 %vm1304_vm0, %v1303_v0 }
 0x11a   : > { %1089 = vmatmul.mubr.msk.f32.gmra.mrb[6].mxu1 %vm548_vm4, %v460_v13 }
 0x11b   : > { %1091 = vmatprep.mubr.msk.f32.mxu1 %vm1304_vm0, %v1303_v0 }
 0x11e   : > { %1092 = vmatmul.mubr.msk.f32.gmra.mrb[8].mxu1 %vm548_vm4, %v461_v14 }
 0x11f   : > { %1094 = vmatprep.mubr.msk.f32.mxu1 %vm1304_vm0, %v1303_v0 }
 0x122   : > { %1095 = vmatmul.mubr.msk.f32.gmra.mrb[10].mxu1 %vm548_vm4, %v462_v15 }
 0x123   : > { %1097 = vmatprep.mubr.msk.f32.mxu1 %vm1304_vm0, %v1303_v0 }
 0x126   : > { %1098 = vmatmul.mubr.msk.f32.gmra.mrb[12].mxu1 %vm548_vm4, %v463_v16 }
 0x127   : > { %1100 = vmatprep.mubr.msk.f32.mxu1 %vm1304_vm0, %v1303_v0 }
 0x12a   : > { %1101 = vmatmul.mubr.msk.f32.gmra.mrb[14].mxu1 %vm548_vm4, %v464_v17  ;;  %v536_v17 = vpop.permute.xlu1 %535 }
 0x12b   : > { %1103 = vmatprep.mubr.msk.f32.mxu1 %vm1304_vm0, %v1303_v0 }
 0x12e   : > { %1104 = vmatmul.mubr.msk.f32.gmra.mrb[16].mxu1 %vm548_vm4, %v465_v18 }
 0x12f   : > { %1106 = vmatprep.mubr.msk.f32.mxu1 %vm1304_vm0, %v1303_v0 }
 0x132   : > { %1107 = vmatmul.mubr.msk.f32.gmra.mrb[18].mxu1 %vm548_vm4, %v466_v19  ;;  %v541_v19 = vpop.permute.xlu0 %540 }
 0x133   : > { %1109 = vmatprep.mubr.msk.f32.mxu1 %vm1304_vm0, %v1303_v0 }
 0x136   : > { %1110 = vmatmul.mubr.msk.f32.gmra.mrb[20].mxu1 %vm548_vm4, %v467_v20 }
 0x137   : > { %1112 = vmatprep.mubr.msk.f32.mxu1 %vm1304_vm0, %v1303_v0 }
 0x13a   : > { %1113 = vmatmul.mubr.msk.f32.gmra.mrb[22].mxu1 %vm548_vm4, %v468_v21 }
 0x13b   : > { %1115 = vmatprep.mubr.msk.f32.mxu1 %vm1304_vm0, %v1303_v0 }
 0x13e   : > { %1116 = vmatmul.mubr.msk.f32.gmra.mrb[24].mxu1 %vm548_vm4, %v469_v22 }
 0x1e1   : > { %v658_v24 = vpop.f32.mrb[0].mxu1 }
 0x1e2   : > { %v1081_v25 = vpop.f32.mrb[1].mxu1  ;;  %v659_v27 = vadd.f32 %v658_v24, %v486_v26 }
 0x1e3   : > { %v546_v25 = vpop.permute.xlu1 %545 }
 0x1e4   : > { %v722_v31 = vmax.f32 %v659_v27, 0.0 }
 0x1e5   : > { %v663_v29 = vpop.f32.mrb[2].mxu1 }
 0x1e6   : > { %v664_v0 = vadd.f32 %v663_v29, %v491_v28  ;;  %v1084_v30 = vpop.f32.mrb[3].mxu1 }
 0x1e7   : > { %v736_v30 = vld [vmem:[%s1669_s5 + $0x8] sm:$0xff] }
 0x1e8   : > { %v723_v32 = vmax.f32 %v664_v0, 0.0 }
 0x1e9   : > { %v668_v33 = vpop.f32.mrb[4].mxu1 }
 0x1ea   : > { %v1159_v34 = vpack.c.bf16 %v723_v32, %v722_v31  ;;  %v1087_v35 = vpop.f32.mrb[5].mxu1  ;;  %v669_v37 = vadd.f32 %v668_v33, %v496_v36  ;;  %v737_v31 = vld [vmem:[%s1669_s5 + $0x10] sm:$0xff]  ;;  %v738_v32 = vld [vmem:[%s1669_s5 + $0x18] sm:$0xff]  ;;  %v751_v33 = vpop.permute.xlu1 %750 }
 0x1ec   : > { %1160 = vmatprep.subr.bf16.mxu0 %v1159_v34  ;;  %v724_v42 = vmax.f32 %v669_v37, 0.0 }
 0x1ed   : > { %v673_v39 = vpop.f32.mrb[6].mxu1  ;;  %1162 = vmatpush3.bf16.msra.mxu0 %v1159_v34  ;;  %v746_v34 = vpop.permute.xlu0 %745 }
 0x1ee   : > { %v674_v40 = vadd.f32 %v673_v39, %v501_v38  ;;  %v1090_v41 = vpop.f32.mrb[7].mxu1 }
 0x1f0   : > { %v725_v43 = vmax.f32 %v674_v40, 0.0  ;;  %v761_v40 = vpop.permute.xlu1 %760 }
 0x1f1   : > { %v678_v44 = vpop.f32.mrb[8].mxu1 }
 0x1f2   : > { %v1163_v45 = vpack.c.bf16 %v725_v43, %v724_v42  ;;  %v1093_v46 = vpop.f32.mrb[9].mxu1  ;;  %v679_v48 = vadd.f32 %v678_v44, %v506_v47  ;;  %v756_v43 = vpop.permute.xlu0 %755 }
 0x1f4   : > { %1164 = vmatprep.subr.bf16.mxu0 %v1163_v45  ;;  %v726_v53 = vmax.f32 %v679_v48, 0.0 }
 0x1f5   : > { %v683_v50 = vpop.f32.mrb[10].mxu1  ;;  %1166 = vmatpush3.bf16.msra.mxu0 %v1163_v45 }
 0x1f6   : > { %v684_v51 = vadd.f32 %v683_v50, %v511_v49  ;;  %v1096_v52 = vpop.f32.mrb[11].mxu1 }
 0x1f8   : > { %v727_v54 = vmax.f32 %v684_v51, 0.0 }
 0x1f9   : > { %v688_v55 = vpop.f32.mrb[12].mxu1 }
 0x1fa   : > { %v1167_v56 = vpack.c.bf16 %v727_v54, %v726_v53  ;;  %v1099_v57 = vpop.f32.mrb[13].mxu1  ;;  %v689_v59 = vadd.f32 %v688_v55, %v516_v58 }
 0x1fc   : > { %1168 = vmatprep.subr.bf16.mxu0 %v1167_v56  ;;  %v728_v1 = vmax.f32 %v689_v59, 0.0 }
 0x1fd   : > { %v693_v61 = vpop.f32.mrb[14].mxu1  ;;  %1170 = vmatpush3.bf16.msra.mxu0 %v1167_v56 }
 0x1fe   : > { %v694_v62 = vadd.f32 %v693_v61, %v521_v60  ;;  %v1102_v63 = vpop.f32.mrb[15].mxu1 }
 0x200   : > { %v729_v2 = vmax.f32 %v694_v62, 0.0 }
 0x201   : > { %v698_v3 = vpop.f32.mrb[16].mxu1 }
 0x202   : > { %v1171_v4 = vpack.c.bf16 %v729_v2, %v728_v1  ;;  %v1105_v5 = vpop.f32.mrb[17].mxu1  ;;  %v699_v7 = vadd.f32 %v698_v3, %v526_v6 }
 0x204   : > { %1172 = vmatprep.subr.bf16.mxu0 %v1171_v4  ;;  %v730_v12 = vmax.f32 %v699_v7, 0.0 }
 0x205   : > { %v703_v9 = vpop.f32.mrb[18].mxu1  ;;  %1174 = vmatpush3.bf16.msra.mxu0 %v1171_v4 }
 0x206   : > { %v704_v10 = vadd.f32 %v703_v9, %v531_v8  ;;  %v1108_v11 = vpop.f32.mrb[19].mxu1 }
 0x208   : > { %v731_v13 = vmax.f32 %v704_v10, 0.0 }
 0x209   : > { %v708_v14 = vpop.f32.mrb[20].mxu1 }
 0x20a   : > { %v1175_v15 = vpack.c.bf16 %v731_v13, %v730_v12  ;;  %v1111_v16 = vpop.f32.mrb[21].mxu1  ;;  %v709_v18 = vadd.f32 %v708_v14, %v536_v17 }
 0x20c   : > { %1176 = vmatprep.subr.bf16.mxu0 %v1175_v15  ;;  %v732_v23 = vmax.f32 %v709_v18, 0.0 }
 0x20d   : > { %v713_v20 = vpop.f32.mrb[22].mxu1  ;;  %1178 = vmatpush3.bf16.msra.mxu0 %v1175_v15 }
 0x20e   : > { %v714_v21 = vadd.f32 %v713_v20, %v541_v19  ;;  %v1114_v22 = vpop.f32.mrb[23].mxu1 }
 0x210   : > { %v733_v24 = vmax.f32 %v714_v21, 0.0 }
 0x211   : > { %v718_v26 = vpop.f32.mrb[24].mxu1 }
 0x212   : > { %v1179_v27 = vpack.c.bf16 %v733_v24, %v732_v23  ;;  %v719_v28 = vadd.f32 %v718_v26, %v546_v25  ;;  %v1117_v29 = vpop.f32.mrb[25].mxu1 }
 0x214   : > { %v734_v0 = vmax.f32 %v719_v28, 0.0  ;;  %1180 = vmatprep.subr.bf16.mxu0 %v1179_v27 }
 0x215   : > { %1182 = vmatpush3.bf16.msra.mxu0 %v1179_v27 }
 0x216   : > { %1142 = vmatprep.subr.msk.mxu0 %vm776_vm6, %v734_v0 }
 0x219   : > { %1143 = vmatpush3.msk.msra.mxu0 %vm776_vm6, %v734_v0 }
 0x21a   : > { %1145 = vmatmul.mubr.msk.f32.vlgmr.msra.gmra.mrb[14].mxu0 %vm763_vm5, %v736_v30 }
 0x21b   : > { %1147 = vmatprep.mubr.msk.f32.mxu0 %vm763_vm5, %v737_v31 }
 0x21e   : > { %1148 = vmatmul.mubr.msk.f32.gmra.mrb[16].mxu0 %vm763_vm5, %v738_v32 }
 0x2ed   : > { %v1146_v35 = vpop.f32.mrb[14].mxu0 }
 0x2ee   : > { %v852_v36 = vadd.f32 %v1146_v35, %v751_v33  ;;  %v846_v37 = vpop.f32.mrb[15].mxu0 }
 0x2ef   : > { %v847_v38 = vadd.f32 %v846_v37, %v746_v34 }
 0x2f0   : > { %v866_v39 = vmul.f32 0.5, %v852_v36 }
 0x2f1   : > { %v865_v41 = vmul.f32 0.5, %v847_v38  ;;  %v1149_v42 = vpop.f32.mrb[16].mxu0 }
 0x2f2   : > { %1231 = vtanh.f32 %v866_v39  ;;  %v862_v44 = vadd.f32 %v1149_v42, %v761_v40  ;;  %v856_v45 = vpop.f32.mrb[17].mxu0 }
 0x2f3   : > { %1233 = vtanh.f32 %v865_v41  ;;  %v857_v46 = vadd.f32 %v856_v45, %v756_v43 }
 0x2f4   : > { %v868_v47 = vmul.f32 0.5, %v862_v44 }
 0x2f5   : > { %v867_v48 = vmul.f32 0.5, %v857_v46 }
 0x2f6   : > { %1235 = vtanh.f32 %v868_v47 }
 0x2f7   : > { %1237 = vtanh.f32 %v867_v48 }
 0x2fc   : > { %v1232_v49 = vpop.eup %1231 }
 0x2fd   : > { %v1234_v50 = vpop.eup %1233  ;;  %v874_v51 = vmul.f32 0.5, %v1232_v49 }
 0x2fe   : > { %v873_v52 = vmul.f32 0.5, %v1234_v50 }
 0x2ff   : > { %v878_v53 = vadd.f32 0.5, %v874_v51 }
 0x300   : > { %v1236_v54 = vpop.eup %1235  ;;  %v877_v55 = vadd.f32 0.5, %v873_v52 }
 0x301   : > { %v1238_v56 = vpop.eup %1237  ;;  %882 = vst [vmem:[%s269_s18 + $0x8] sm:$0xff] %v878_v53  ;;  %v876_v57 = vmul.f32 0.5, %v1236_v54 }
 0x302   : > { %881 = vst [vmem:[%s269_s18] sm:$0xff] %v877_v55  ;;  %v875_v58 = vmul.f32 0.5, %v1238_v56 }
 0x303   : > { %v880_v59 = vadd.f32 0.5, %v876_v57 }
 0x304   : > { %v879_v60 = vadd.f32 0.5, %v875_v58 }
 0x305   : > { %884 = vst [vmem:[%s269_s18 + $0x18] sm:$0xff] %v880_v59 }
 0x306   : > { %883 = vst [vmem:[%s269_s18 + $0x10] sm:$0xff] %v879_v60 }
 0x307   : > { %1252 = shalt.err (!%p1249_p3)
}
 0x308   : > { %s1253_s13 = scalar_lea.hbm %s1621_s23, 512  ;;  %s1257_s17 = scalar_lea.hbm %s1671_s7, 1024 }
 0x309   : > { %p1254_p4 = scmp.ne.s32.totalorder %s1621_s23, %s1253_s13  ;;  %p1258_p9 = scmp.lt.u32.totalorder %s1621_s23, %s1671_s7 }
 0x30a   : > { %p1259_p10 = scmp.lt.u32.totalorder %s1257_s17, %s1253_s13  ;;  %p1261_p12 = scmp.lt.u32.totalorder %s1253_s13, %s1621_s23 }
 0x30b   : > { %p1255_p7 = pnand %p1254_p4, %p1389_p5 }
 0x30c   : > { %p1260_p11 = por %p1259_p10, %p1258_p9 }
 0x30d   : > { %p1256_p8 = pneg %p1255_p7 }
 0x30e   : > { %p1262_p13 = por %p1261_p12, %p1260_p11 }
 0x310   : > { %p1263_p0 = pnand %p1262_p13, %p1256_p8 }
 0x312   : > { %1266 = shalt.err (!%p1263_p0)
}
 0x313   : > { %s1308_s21 = smov 128   ;;  %s1309_s22 = smov 256  }
 0x314   : > { %s1310_s29 = smov 8  }
 0x315   : > { %1183 = dma.vmem_to_hbm [thread:$0]  (%p1389_p5), %s1616_s19, 512, %s1621_s23, %s1623_s28, %s1308_s21, %s1309_s22, %s1310_s29  }
 0x316 PF: > { %p1189_p1 = scmp.ge.s32.totalorder %s1301_s27, 2  ;;  %s913_s8 = sand.u32 1, %s1289_s24  }
 0x317   : > { %s914_s9 = scalar_lea.sflag [#allocation3], %s913_s8 }
 0x318   : > { %p1186_p2 = pnand %p1189_p1, %p1393_p6 }
 0x31a   : > { %1284 = dma.done.wait (!%p1186_p2), %s914_s9, 512  }
 0x31b   : > { %1286 = vsyncadd (!%p1186_p2), %s914_s9, 4294966784  ;;  %p17_p3 = scmp.ge.s32.totalorder %s1376_s30, 4   ;;  %s1674_s24 = smov %s1293_s25 }
 0x31c   : > { %s1675_s25 = smov %s1297_s26  ;;  %s1676_s26 = smov %s1387_s10 }
 0x31d   : > { %s1677_s27 = smov %s1376_s30  ;;  %19 = sbr.rel (!%p17_p3) target bundleno = 3 (0x3), region = 83 }
 0x324   :  { %919 = vsyncpa [#allocation3], 1 }
 0x325   :  { %921 = vsyncpa [#allocation3 + $0x1], 1 }

</bundles_post_ra>
